<compile_context>
chip_gen: v5e
topology: v5e:2x2
jax: 0.10.0
libtpu: 0.0.40
codegen_flags: <defaults>
</compile_context>

<pallas_src>
import functools

import jax
import jax.numpy as jnp
from jax.experimental import pallas as pl
from jax.experimental.pallas import tpu as pltpu

EPS = 1e-6


def _round_up(x, m):
    return (x + m - 1) // m * m


def _pick_tile(m, candidates=(512, 256, 128)):
    for t in candidates:
        if m % t == 0:
            return t
    return m


def _vmem_capacity_bytes():
    try:
        return int(pltpu.get_tpu_info().vmem_capacity_bytes)
    except Exception:
        return 128 * 1024 * 1024


def _vmem_limit_bytes():
    cap = _vmem_capacity_bytes()
    # Cap at 96 MiB on 128 MiB parts (v5e/v6e); on v7x (64 MiB physical) leave
    # ~12 MiB headroom for Mosaic internal scratch -> ~52 MiB.
    return max(32 * 1024 * 1024, min(96 * 1024 * 1024, cap - 12 * 1024 * 1024))


def _pick_bblk(batch):
    # Bblk=4 on 128 MiB-VMEM parts (v5e/v6e), 2 on v7x; must divide the batch.
    target = 4 if _vmem_capacity_bytes() >= 100 * 1024 * 1024 else 2
    bblk = min(batch, target)
    while batch % bblk:
        bblk -= 1
    return max(bblk, 1)


# ----------------------------- in-kernel helpers -----------------------------

def _layernorm(x, g, b):
    mu = jnp.mean(x, axis=-1, keepdims=True)
    xc = x - mu
    var = jnp.mean(xc * xc, axis=-1, keepdims=True)
    return xc * jax.lax.rsqrt(var + EPS) * g + b


def _gelu(x):
    # exact (erf-based) GELU, matching torch.nn.GELU default
    return jax.nn.gelu(x, approximate=False)


# ----------------------------- Pallas kernels -----------------------------

def patch_embed_kernel(xp_ref, w_ref, b_ref, o_ref):
    # xp: (TM, K) bf16 flattened patches, w: (K, D) bf16, b: (1, D) f32
    o_ref[...] = (jnp.dot(xp_ref[...], w_ref[...],
                          preferred_element_type=jnp.float32)
                  + b_ref[...]).astype(o_ref.dtype)


def fused_block_kernel(num_heads, n_valid, bblk, n_pad,
                       x_ref,
                       g1_ref, b1_ref, wqkv_ref, bqkv_ref, wproj_ref, bproj_ref,
                       g2_ref, b2_ref, wfc1_ref, bfc1_ref, wfc2_ref, bfc2_ref,
                       gn_ref, bn_ref,
                       o_ref, x_vmem):
    """One grid step = (batch block b, encoder layer l).

    Token activations for `bblk` images (flattened to (bblk*n_pad, D)) stay
    resident in the f32 VMEM scratch across the depth axis; per-layer bf16
    weights stream in via the BlockSpec pipeline.  Final LN + masked mean-pool
    run on the last layer.
    """
    l = pl.program_id(1)

    @pl.when(l == 0)
    def _load_x():
        x_vmem[...] = x_ref[...].astype(jnp.float32)

    x = x_vmem[...]                                   # (M, D) f32, M = bblk*n_pad
    M, D = x.shape
    H = num_heads
    dh = D // H
    scale = dh ** -0.5

    # ------------- attention: x += proj(attn(norm1(x))) -------------
    hn = _layernorm(x, g1_ref[0], b1_ref[0]).astype(jnp.bfloat16)
    # Fused QKV projection: one (M, D) x (D, 3D) matmul, columns [Wq|Wk|Wv].
    qkv = jnp.dot(hn, wqkv_ref[0],
                  preferred_element_type=jnp.float32) + bqkv_ref[0]   # (M, 3D) f32

    key_ok = jax.lax.broadcasted_iota(jnp.int32, (1, 1, n_pad), 2) < n_valid

    attn_rows = []
    for i in range(bblk):                              # static, small unrolled loop
        rows = qkv[i * n_pad:(i + 1) * n_pad]          # (N, 3D)
        q = (rows[:, :D] * scale).astype(jnp.bfloat16)   # fold 1/sqrt(dh) into q
        k = rows[:, D:2 * D].astype(jnp.bfloat16)
        v = rows[:, 2 * D:].astype(jnp.bfloat16)
        # Head split: static lane slices stacked on a leading batch dim.
        qh = jnp.stack([q[:, h * dh:(h + 1) * dh] for h in range(H)], axis=0)
        kh = jnp.stack([k[:, h * dh:(h + 1) * dh] for h in range(H)], axis=0)
        vh = jnp.stack([v[:, h * dh:(h + 1) * dh] for h in range(H)], axis=0)

        logits = jnp.einsum("hqd,hkd->hqk", qh, kh,
                            preferred_element_type=jnp.float32)       # (H, N, N)
        logits = jnp.where(key_ok, logits, -1e30)      # mask padded keys
        logits = logits - jnp.max(logits, axis=-1, keepdims=True)
        p = jnp.exp(logits)
        p = p * pl.reciprocal(jnp.sum(p, axis=-1, keepdims=True), approx=False)

        av = jnp.einsum("hqk,hkd->hqd", p.astype(jnp.bfloat16), vh,
                        preferred_element_type=jnp.float32)           # (H, N, dh)
        # Merge heads back onto the lane dim -> (N, D).
        attn_rows.append(jnp.concatenate([av[h] for h in range(H)], axis=-1))

    attn = jnp.concatenate(attn_rows, axis=0).astype(jnp.bfloat16)    # (M, D)
    # Single fused output projection (accumulates across heads on the MXU).
    proj = jnp.dot(attn, wproj_ref[0],
                   preferred_element_type=jnp.float32) + bproj_ref[0]
    x = x + proj

    # ------------- MLP: x += fc2(gelu(fc1(norm2(x)))) -------------
    hm = _layernorm(x, g2_ref[0], b2_ref[0]).astype(jnp.bfloat16)
    h1 = jnp.dot(hm, wfc1_ref[0], preferred_element_type=jnp.float32) + bfc1_ref[0]
    h1 = _gelu(h1).astype(jnp.bfloat16)
    h2 = jnp.dot(h1, wfc2_ref[0], preferred_element_type=jnp.float32) + bfc2_ref[0]
    x = x + h2

    x_vmem[...] = x

    # ------------- final LayerNorm + masked mean-pool -------------
    @pl.when(l == pl.num_programs(1) - 1)
    def _pool():
        xf = _layernorm(x, gn_ref[...], bn_ref[...])
        tok_ok = jax.lax.broadcasted_iota(jnp.int32, (n_pad, 1), 0) < n_valid
        inv_n = 1.0 / float(n_valid)
        for i in range(bblk):
            xi = xf[i * n_pad:(i + 1) * n_pad]
            pooled = jnp.sum(jnp.where(tok_ok, xi, 0.0),
                             axis=0, keepdims=True) * inv_n            # (1, D)
            o_ref[i] = pooled


def head_kernel(p_ref, w_ref, b_ref, o_ref):
    o_ref[...] = (jnp.dot(p_ref[...].astype(jnp.bfloat16), w_ref[...],
                          preferred_element_type=jnp.float32) + b_ref[...])


# ----------------------------- wrappers -----------------------------

def patch_embed(x, w_patch, b_patch, patch_size, n_pad):
    """conv(kernel=stride=patch) == matmul over flattened (C,P,P) patches.
    Emits bf16 activations (halves the HBM round trip to the encoder)."""
    B, C, H, W = x.shape
    P = patch_size
    Hn, Wn = H // P, W // P
    N = Hn * Wn
    K = C * P * P
    D = w_patch.shape[1]

    patches = (x.reshape(B, C, Hn, P, Wn, P)
                 .transpose(0, 2, 4, 1, 3, 5)
                 .reshape(B, N, K))
    if n_pad > N:
        patches = jnp.pad(patches, ((0, 0), (0, n_pad - N), (0, 0)))
    patches = patches.reshape(B * n_pad, K).astype(jnp.bfloat16)

    M = B * n_pad
    TM = _pick_tile(M)
    return pl.pallas_call(
        patch_embed_kernel,
        out_shape=jax.ShapeDtypeStruct((M, D), jnp.bfloat16),
        grid=(M // TM,),
        in_specs=[pl.BlockSpec((TM, K), lambda i: (i, 0)),
                  pl.BlockSpec((K, D), lambda i: (0, 0)),
                  pl.BlockSpec((1, D), lambda i: (0, 0))],
        out_specs=pl.BlockSpec((TM, D), lambda i: (i, 0)),
        compiler_params=pltpu.CompilerParams(
            dimension_semantics=("parallel",),
            vmem_limit_bytes=_vmem_limit_bytes()),
    )(patches, w_patch, b_patch)


def stack_block_params(blocks):
    """Stack per-layer params along a leading depth axis (bf16 weights,
    f32 biases / LN params).  Weights already stored in (in, out) matmul
    layout with QKV columns ordered [Wq | Wk | Wv]."""
    return {k: jnp.stack([bp[k] for bp in blocks], axis=0)
            for k in blocks[0].keys()}


def encoder(x_emb_flat, stacked, norm_g, norm_b, num_heads, n_valid, n_pad):
    M_total, D = x_emb_flat.shape
    B = M_total // n_pad
    depth = stacked["wqkv"].shape[0]
    bblk = _pick_bblk(B)

    names = ["g1", "b1", "wqkv", "bqkv", "wproj", "bproj",
             "g2", "b2", "wfc1", "bfc1", "wfc2", "bfc2"]
    layer_args = [stacked[k] for k in names]

    def layer_spec(arr):
        nd = arr.ndim
        return pl.BlockSpec((1,) + arr.shape[1:],
                            lambda b, l, _nd=nd: (l,) + (0,) * (_nd - 1))

    def const_spec(arr):
        nd = arr.ndim
        return pl.BlockSpec(arr.shape, lambda b, l, _nd=nd: (0,) * _nd)

    in_specs = [pl.BlockSpec((bblk * n_pad, D), lambda b, l: (b, 0))]
    in_specs += [layer_spec(a) for a in layer_args]
    in_specs += [const_spec(norm_g), const_spec(norm_b)]

    pooled = pl.pallas_call(
        functools.partial(fused_block_kernel, num_heads, n_valid, bblk, n_pad),
        out_shape=jax.ShapeDtypeStruct((B, 1, D), jnp.float32),
        grid=(B // bblk, depth),
        in_specs=in_specs,
        out_specs=pl.BlockSpec((bblk, 1, D), lambda b, l: (b, 0, 0)),
        scratch_shapes=[pltpu.VMEM((bblk * n_pad, D), jnp.float32)],
        compiler_params=pltpu.CompilerParams(
            dimension_semantics=("parallel", "arbitrary"),
            vmem_limit_bytes=_vmem_limit_bytes()),
    )(x_emb_flat, *layer_args, norm_g, norm_b)
    return pooled.reshape(B, D)


def classifier_head(pooled, head_w, head_b):
    """Tiny separate pallas_call so the head weights are not resident in VMEM
    during the depth loop (v7x VMEM budget)."""
    B, D = pooled.shape
    C = head_w.shape[1]
    return pl.pallas_call(
        head_kernel,
        out_shape=jax.ShapeDtypeStruct((B, C), jnp.float32),
        grid=(1,),
        in_specs=[pl.BlockSpec((B, D), lambda i: (0, 0)),
                  pl.BlockSpec((D, C), lambda i: (0, 0)),
                  pl.BlockSpec((1, C), lambda i: (0, 0))],
        out_specs=pl.BlockSpec((B, C), lambda i: (0, 0)),
        compiler_params=pltpu.CompilerParams(
            vmem_limit_bytes=_vmem_limit_bytes()),
    )(pooled, head_w, head_b)


def vit_forward(x, params, patch_size, num_heads):
    B, C, H, W = x.shape
    N = (H // patch_size) * (W // patch_size)
    n_pad = _round_up(N, 128)          # lane-dense logits / full MXU tiles
    x_emb = patch_embed(x, params["patch_w"], params["patch_b"], patch_size, n_pad)
    stacked = stack_block_params(params["blocks"])
    pooled = encoder(x_emb, stacked, params["norm_g"], params["norm_b"],
                     num_heads=num_heads, n_valid=N, n_pad=n_pad)
    return classifier_head(pooled, params["head_w"], params["head_b"])


# ----------------------------- param init -----------------------------

def init_params(key, *, in_chans, patch_size, num_features, depth, mlp_ratio,
                num_classes):
    D = num_features
    Hm = int(D * mlp_ratio)
    K = in_chans * patch_size * patch_size
    keys = jax.random.split(key, 2 + depth)

    def dense(k, fan_in, fan_out):
        # bf16 weights in HBM; matmuls accumulate in f32 on the MXU.
        return (0.02 * jax.random.normal(k, (fan_in, fan_out), jnp.float32)
                ).astype(jnp.bfloat16)

    params = {
        # conv(kernel=stride=patch) stored directly in its (C*P*P, D) matmul form
        "patch_w": dense(keys[0], K, D),
        "patch_b": jnp.zeros((1, D), jnp.float32),
        "norm_g": jnp.ones((1, D), jnp.float32),
        "norm_b": jnp.zeros((1, D), jnp.float32),
        "head_w": dense(keys[1], D, num_classes),
        "head_b": jnp.zeros((1, num_classes), jnp.float32),
        "blocks": [],
    }
    for d in range(depth):
        bk = jax.random.split(keys[2 + d], 4)
        params["blocks"].append({
            "g1": jnp.ones((1, D), jnp.float32),
            "b1": jnp.zeros((1, D), jnp.float32),
            "wqkv": dense(bk[0], D, 3 * D),          # columns [Wq | Wk | Wv]
            "bqkv": jnp.zeros((1, 3 * D), jnp.float32),
            "wproj": dense(bk[1], D, D),
            "bproj": jnp.zeros((1, D), jnp.float32),
            "g2": jnp.ones((1, D), jnp.float32),
            "b2": jnp.zeros((1, D), jnp.float32),
            "wfc1": dense(bk[2], D, Hm),
            "bfc1": jnp.zeros((1, Hm), jnp.float32),
            "wfc2": dense(bk[3], Hm, D),
            "bfc2": jnp.zeros((1, D), jnp.float32),
        })
    return params


# ----------------------------- main -----------------------------

if __name__ == "__main__":
    # Small, module-consistent shapes: image (B=2, C=4, 16x16), patch 8 ->
    # 4 tokens (padded to 128), num_features=32, depth=2, 4 heads,
    # mlp_ratio=4, 8 classes.
    B, C_IN, HI, WI = 2, 4, 16, 16
    PATCH = 8
    D = 32
    DEPTH = 2
    HEADS = 4
    MLP_RATIO = 4.0
    NUM_CLASSES = 8

    key = jax.random.PRNGKey(0)
    kp, kx = jax.random.split(key)
    params = init_params(kp, in_chans=C_IN, patch_size=PATCH, num_features=D,
                         depth=DEPTH, mlp_ratio=MLP_RATIO,
                         num_classes=NUM_CLASSES)
    x = jax.random.normal(kx, (B, C_IN, HI, WI), jnp.float32)

    out = vit_forward(x, params, PATCH, HEADS)
    jax.block_until_ready(out)
    assert out.shape == (B, NUM_CLASSES)
    assert bool(jnp.all(jnp.isfinite(out)))
    print("KERNEL_OK")
</pallas_src>

<mosaic_0001>
module attributes {stable_mosaic.version = 11 : i64} {
  func.func @patch_embed_kernel(%arg0: i32, %arg1: memref<256x256xbf16, #tpu.memory_space<vmem>>, %arg2: memref<256x32xbf16, #tpu.memory_space<vmem>>, %arg3: memref<1x32xf32, #tpu.memory_space<vmem>>, %arg4: memref<256x32xbf16, #tpu.memory_space<vmem>>) attributes {dimension_semantics = [#tpu.dimension_semantics<parallel>], iteration_bounds = array<i64: 1>, scalar_prefetch = 0 : i64, scratch_operands = 0 : i64, tpu.core_type = #tpu.core_type<tc>, window_params = [{transform_indices = @transform_0, window_bounds = array<i64: 256, 256>}, {pipeline_mode = #tpu.pipeline_mode<synchronous>, transform_indices = @transform_1, window_bounds = array<i64: 256, 32>}, {pipeline_mode = #tpu.pipeline_mode<synchronous>, transform_indices = @transform_2, window_bounds = array<i64: 1, 32>}, {transform_indices = @transform_3, window_bounds = array<i64: 256, 32>}]} {
    %c0 = arith.constant 0 : index
    %c0_0 = arith.constant 0 : index
    %0 = vector.load %arg1[%c0, %c0_0] : memref<256x256xbf16, #tpu.memory_space<vmem>>, vector<256x256xbf16>
    %c0_1 = arith.constant 0 : index
    %c0_2 = arith.constant 0 : index
    %1 = vector.load %arg2[%c0_1, %c0_2] : memref<256x32xbf16, #tpu.memory_space<vmem>>, vector<256x32xbf16>
    %cst = arith.constant dense<0.000000e+00> : vector<256x32xf32>
    %2 = tpu.matmul %0, %1, %cst {dimension_numbers = #tpu.dot_dimension_numbers<[1], [0], [0], [1], [0, 0, 1, 1], [], []>} : vector<256x256xbf16>, vector<256x32xbf16>, vector<256x32xf32> -> vector<256x32xf32>
    %c0_3 = arith.constant 0 : index
    %c0_4 = arith.constant 0 : index
    %3 = vector.load %arg3[%c0_3, %c0_4] : memref<1x32xf32, #tpu.memory_space<vmem>>, vector<1x32xf32>
    %4 = vector.broadcast %3 : vector<1x32xf32> to vector<256x32xf32>
    %5 = arith.addf %2, %4 : vector<256x32xf32>
    %6 = arith.truncf %5 : vector<256x32xf32> to vector<256x32xbf16>
    %c0_5 = arith.constant 0 : index
    %c0_6 = arith.constant 0 : index
    %7 = vector.load %arg4[%c0_5, %c0_6] : memref<256x32xbf16, #tpu.memory_space<vmem>>, vector<256x32xbf16>
    tpu.vector_store %arg4[%c0_5, %c0_6], %6 {strides = array<i32>} : memref<256x32xbf16, #tpu.memory_space<vmem>>, vector<256x32xbf16>,
    return
  }
  func.func @transform_0(%arg0: i32) -> (i32, i32) {
    %c0_i32 = arith.constant 0 : i32
    %c0_i32_0 = arith.constant 0 : i32
    return %arg0, %c0_i32 : i32, i32
  }
  func.func @transform_1(%arg0: i32) -> (i32, i32) {
    %c0_i32 = arith.constant 0 : i32
    %c0_i32_0 = arith.constant 0 : i32
    %c0_i32_1 = arith.constant 0 : i32
    return %c0_i32, %c0_i32_0 : i32, i32
  }
  func.func @transform_2(%arg0: i32) -> (i32, i32) {
    %c0_i32 = arith.constant 0 : i32
    %c0_i32_0 = arith.constant 0 : i32
    %c0_i32_1 = arith.constant 0 : i32
    return %c0_i32, %c0_i32_0 : i32, i32
  }
  func.func @transform_3(%arg0: i32) -> (i32, i32) {
    %c0_i32 = arith.constant 0 : i32
    %c0_i32_0 = arith.constant 0 : i32
    return %arg0, %c0_i32 : i32, i32
  }
}

</mosaic_0001>

<bundles_post_ra>
// kernel: tpu_custom_call.1
= control target key start
LH: loop header
LB: loop body
LE: loop exit
PB: predicated region body
PF: predicated region fallthrough
CT: control target
= control target key end

     0   :  { %8 = vsyncpa [#allocation3], 0  ;;  %s888_s15 = smov [#allocation2]   ;;  %s889_s17 = smov 128   ;;  %s1127_s0 = inlined_call_operand.hbm [shape: bf16[256,256], index: 0, kind: input, shape index: {}]   ;;  %s1128_s1 = inlined_call_operand.vmem [shape: bf16[256,32], index: 1, kind: input, shape index: {}]   ;;  %s1129_s2 = inlined_call_operand.vmem [shape: f32[1,32], index: 2, kind: input, shape index: {}]   ;;  %s1130_s3 = inlined_call_operand.vmem [shape: bf16[256,32], index: 3, kind: output, shape index: {}]  }
   0x1   :  { %s13_s14 = sshll.u32 %s1127_s0, 4  ;;  %s15_s16 = sshll.u32 %s888_s15, 4  ;;  %s14_s14 = int_to_ptr.hbm [resolvable:$true] %s13_s14  ;;  %s16_s16 = int_to_ptr.vmem [resolvable:$true] %s15_s16 }
   0x2   :  { %s890_s18 = smov 8  }
   0x3   :  { %21 = dma.hbm_to_vmem [thread:$0]  %s14_s14, 4096, %s16_s16, [#allocation3], %s889_s17, %s889_s17, %s890_s18  }
   0x4   :  { %886 = dma.done.wait [#allocation3], 4096  }
   0x5   :  { %887 = vsyncadd [#allocation3], 4294963200  ;;  %v833_v0 = vld [vmem:[%s1128_s1 + $0x38] sm:$0xff]  ;;  %v832_v2 = vld [vmem:[%s1128_s1 + $0x30] sm:$0xff]  ;;  %vm564_vm0 = vcmask 257024  }
   0x6   :  { %v841_v1 = vld [vmem:[%s1128_s1 + $0x78] sm:$0xff]  ;;  %354 = vmatpush.bf16.msra.mxu0 %v833_v0  ;;  %842 = vmatpush.bf16.msra.mxu2 %v833_v0  ;;  %v840_v3 = vld [vmem:[%s1128_s1 + $0x70] sm:$0xff]  ;;  %v831_v4 = vld [vmem:[%s1128_s1 + $0x28] sm:$0xff] }
   0x7   :  { %443 = vmatpush.bf16.msra.mxu1 %v841_v1  ;;  %850 = vmatpush.bf16.msra.mxu3 %v841_v1  ;;  %v839_v5 = vld [vmem:[%s1128_s1 + $0x68] sm:$0xff]  ;;  %v830_v6 = vld [vmem:[%s1128_s1 + $0x20] sm:$0xff]  ;;  %v829_v8 = vld [vmem:[%s1128_s1 + $0x18] sm:$0xff] }
   0x8   :  { %v838_v7 = vld [vmem:[%s1128_s1 + $0x60] sm:$0xff]  ;;  %v837_v9 = vld [vmem:[%s1128_s1 + $0x58] sm:$0xff]  ;;  %v828_v10 = vld [vmem:[%s1128_s1 + $0x10] sm:$0xff] }
   0x9   :  { %v836_v11 = vld [vmem:[%s1128_s1 + $0x50] sm:$0xff]  ;;  %v827_v12 = vld [vmem:[%s1128_s1 + $0x8] sm:$0xff]  ;;  %v826_v14 = vld [vmem:[%s1128_s1] sm:$0xff] }
   0xa   :  { %355 = vmatpush.bf16.msra.mxu0 %v832_v2  ;;  %843 = vmatpush.bf16.msra.mxu2 %v832_v2  ;;  %v835_v13 = vld [vmem:[%s1128_s1 + $0x48] sm:$0xff]  ;;  %v834_v15 = vld [vmem:[%s1128_s1 + $0x40] sm:$0xff]  ;;  %v612_v28 = vld [vmem:[#allocation2 + $0x10] sm:$0xf] }
   0xb   :  { %444 = vmatpush.bf16.msra.mxu1 %v840_v3  ;;  %851 = vmatpush.bf16.msra.mxu3 %v840_v3  ;;  %v604_v16 = vld [vmem:[#allocation2] sm:$0xf]  ;;  %v795_v17 = vld [vmem:[#allocation2 + $0x4] sm:$0xf0]  ;;  %v794_v20 = vld [vmem:[#allocation2 + $0x4] sm:$0xf] }
   0xc   :  { %v668_v18 = vld [vmem:[#allocation2 + $0x80] sm:$0xf]  ;;  %v811_v19 = vld [vmem:[#allocation2 + $0x84] sm:$0xf0]  ;;  %v606_v21 = vld [vmem:[#allocation2 + $0x8] sm:$0xf0]  ;;  %v605_v24 = vor.u32 %v795_v17, %v604_v16 }
   0xd   :  { %v810_v22 = vld [vmem:[#allocation2 + $0x84] sm:$0xf]  ;;  %v670_v23 = vld [vmem:[#allocation2 + $0x88] sm:$0xf0]  ;;  %v669_v25 = vor.u32 %v811_v19, %v668_v18  ;;  %v609_v26 = vor.u32 %v794_v20, %v606_v21  ;;  %v797_v29 = vld [vmem:[#allocation2 + $0x14] sm:$0xf0] }
   0xe   :  { %356 = vmatpush.bf16.msra.mxu0 %v831_v4  ;;  %844 = vmatpush.bf16.msra.mxu2 %v831_v4  ;;  %v673_v27 = vor.u32 %v810_v22, %v670_v23  ;;  %v676_v30 = vld [vmem:[#allocation2 + $0x90] sm:$0xf]  ;;  %v813_v31 = vld [vmem:[#allocation2 + $0x94] sm:$0xf0]  ;;  %v796_v32 = vld [vmem:[#allocation2 + $0x14] sm:$0xf]  ;;  %v613_v36 = vor.u32 %v797_v29, %v612_v28 }
   0xf   :  { %445 = vmatpush.bf16.msra.mxu1 %v839_v5  ;;  %852 = vmatpush.bf16.msra.mxu3 %v839_v5  ;;  %v614_v33 = vld [vmem:[#allocation2 + $0x18] sm:$0xf0]  ;;  %v812_v34 = vld [vmem:[#allocation2 + $0x94] sm:$0xf]  ;;  %v677_v37 = vor.u32 %v813_v31, %v676_v30  ;;  %v620_v40 = vld [vmem:[#allocation2 + $0x20] sm:$0xf] }
  0x10   :  { %v678_v35 = vld [vmem:[#allocation2 + $0x98] sm:$0xf0]  ;;  %v617_v38 = vor.u32 %v796_v32, %v614_v33  ;;  %v799_v41 = vld [vmem:[#allocation2 + $0x24] sm:$0xf0]  ;;  %v684_v42 = vld [vmem:[#allocation2 + $0xa0] sm:$0xf] }
  0x11   :  { %v681_v39 = vor.u32 %v812_v34, %v678_v35  ;;  %v815_v43 = vld [vmem:[#allocation2 + $0xa4] sm:$0xf0]  ;;  %v798_v44 = vld [vmem:[#allocation2 + $0x24] sm:$0xf]  ;;  %v622_v45 = vld [vmem:[#allocation2 + $0x28] sm:$0xf0]  ;;  %v621_v48 = vor.u32 %v799_v41, %v620_v40 }
  0x12   :  { %357 = vmatpush.bf16.msra.mxu0 %v830_v6  ;;  %845 = vmatpush.bf16.msra.mxu2 %v830_v6  ;;  %v814_v46 = vld [vmem:[#allocation2 + $0xa4] sm:$0xf]  ;;  %v686_v47 = vld [vmem:[#allocation2 + $0xa8] sm:$0xf0]  ;;  %v685_v49 = vor.u32 %v815_v43, %v684_v42  ;;  %v625_v50 = vor.u32 %v798_v44, %v622_v45  ;;  %v628_v52 = vld [vmem:[#allocation2 + $0x30] sm:$0xf] }
  0x13   :  { %446 = vmatpush.bf16.msra.mxu1 %v838_v7  ;;  %853 = vmatpush.bf16.msra.mxu3 %v838_v7  ;;  %v689_v51 = vor.u32 %v814_v46, %v686_v47  ;;  %v801_v53 = vld [vmem:[#allocation2 + $0x34] sm:$0xf0]  ;;  %v692_v54 = vld [vmem:[#allocation2 + $0xb0] sm:$0xf]  ;;  %v800_v56 = vld [vmem:[#allocation2 + $0x34] sm:$0xf] }
  0x14   :  { %v817_v55 = vld [vmem:[#allocation2 + $0xb4] sm:$0xf0]  ;;  %v630_v57 = vld [vmem:[#allocation2 + $0x38] sm:$0xf0]  ;;  %v816_v58 = vld [vmem:[#allocation2 + $0xb4] sm:$0xf]  ;;  %v629_v60 = vor.u32 %v801_v53, %v628_v52 }
  0x15   :  { %v694_v59 = vld [vmem:[#allocation2 + $0xb8] sm:$0xf0]  ;;  %v693_v61 = vor.u32 %v817_v55, %v692_v54  ;;  %v633_v62 = vor.u32 %v800_v56, %v630_v57  ;;  %v636_v0 = vld [vmem:[#allocation2 + $0x40] sm:$0xf]  ;;  %v803_v1 = vld [vmem:[#allocation2 + $0x44] sm:$0xf0] }
  0x16   :  { %358 = vmatpush.bf16.msra.mxu0 %v829_v8  ;;  %846 = vmatpush.bf16.msra.mxu2 %v829_v8  ;;  %v697_v63 = vor.u32 %v816_v58, %v694_v59  ;;  %v700_v2 = vld [vmem:[#allocation2 + $0xc0] sm:$0xf]  ;;  %v819_v3 = vld [vmem:[#allocation2 + $0xc4] sm:$0xf0]  ;;  %v802_v4 = vld [vmem:[#allocation2 + $0x44] sm:$0xf]  ;;  %v637_v8 = vor.u32 %v803_v1, %v636_v0 }
  0x17   :  { %447 = vmatpush.bf16.msra.mxu1 %v837_v9  ;;  %854 = vmatpush.bf16.msra.mxu3 %v837_v9  ;;  %v638_v5 = vld [vmem:[#allocation2 + $0x48] sm:$0xf0]  ;;  %v818_v6 = vld [vmem:[#allocation2 + $0xc4] sm:$0xf]  ;;  %v701_v9 = vor.u32 %v819_v3, %v700_v2  ;;  %v804_v16 = vld [vmem:[#allocation2 + $0x54] sm:$0xf] }
  0x18   :  { %v702_v7 = vld [vmem:[#allocation2 + $0xc8] sm:$0xf0]  ;;  %v646_v17 = vld [vmem:[#allocation2 + $0x58] sm:$0xf0]  ;;  %v820_v18 = vld [vmem:[#allocation2 + $0xd4] sm:$0xf] }
  0x19   :  { %v710_v19 = vld [vmem:[#allocation2 + $0xd8] sm:$0xf0]  ;;  %v649_v22 = vor.u32 %v804_v16, %v646_v17  ;;  %v806_v28 = vld [vmem:[#allocation2 + $0x64] sm:$0xf]  ;;  %v654_v29 = vld [vmem:[#allocation2 + $0x68] sm:$0xf0] }
  0x1a   :  { %359 = vmatpush.bf16.msra.mxu0 %v828_v10  ;;  %847 = vmatpush.bf16.msra.mxu2 %v828_v10  ;;  %v641_v10 = vor.u32 %v802_v4, %v638_v5  ;;  %v713_v23 = vor.u32 %v820_v18, %v710_v19  ;;  %v822_v30 = vld [vmem:[#allocation2 + $0xe4] sm:$0xf]  ;;  %v718_v31 = vld [vmem:[#allocation2 + $0xe8] sm:$0xf0]  ;;  %v657_v34 = vor.u32 %v806_v28, %v654_v29  ;;  %v808_v40 = vld [vmem:[#allocation2 + $0x74] sm:$0xf] }
  0x1b   :  { %448 = vmatpush.bf16.msra.mxu1 %v836_v11  ;;  %855 = vmatpush.bf16.msra.mxu3 %v836_v11  ;;  %v705_v11 = vor.u32 %v818_v6, %v702_v7  ;;  %v721_v35 = vor.u32 %v822_v30, %v718_v31  ;;  %v662_v41 = vld [vmem:[#allocation2 + $0x78] sm:$0xf0]  ;;  %v824_v42 = vld [vmem:[#allocation2 + $0xf4] sm:$0xf] }
  0x1c   :  { %v726_v43 = vld [vmem:[#allocation2 + $0xf8] sm:$0xf0]  ;;  %v665_v46 = vor.u32 %v808_v40, %v662_v41 }
  0x1d   :  { %v729_v47 = vor.u32 %v824_v42, %v726_v43 }
  0x1e   :  { %360 = vmatpush.bf16.msra.mxu0 %v827_v12  ;;  %848 = vmatpush.bf16.msra.mxu2 %v827_v12  ;;  %v644_v12 = vld [vmem:[#allocation2 + $0x50] sm:$0xf] }
  0x1f   :  { %449 = vmatpush.bf16.msra.mxu1 %v835_v13  ;;  %856 = vmatpush.bf16.msra.mxu3 %v835_v13  ;;  %v805_v13 = vld [vmem:[#allocation2 + $0x54] sm:$0xf0] }
  0x20   :  { %v645_v20 = vor.u32 %v805_v13, %v644_v12 }
  0x22   :  { %361 = vmatpush.bf16.msra.mxu0 %v826_v14  ;;  %849 = vmatpush.bf16.msra.mxu2 %v826_v14  ;;  %v708_v14 = vld [vmem:[#allocation2 + $0xd0] sm:$0xf] }
  0x23   :  { %450 = vmatpush.bf16.msra.mxu1 %v834_v15  ;;  %857 = vmatpush.bf16.msra.mxu3 %v834_v15  ;;  %v821_v15 = vld [vmem:[#allocation2 + $0xd4] sm:$0xf0] }
  0x24   :  { %v709_v21 = vor.u32 %v821_v15, %v708_v14 }
  0x25   :  { %362 = vmatmul.bf16.vlgmr.msra.gmra.mxu0 %v605_v24  ;;  %402 = vmatmul.bf16.vlgmr.msra.gmra.mxu2 %v669_v25  ;;  %v652_v24 = vld [vmem:[#allocation2 + $0x60] sm:$0xf]  ;;  %v807_v25 = vld [vmem:[#allocation2 + $0x64] sm:$0xf0] }
  0x26   :  { %451 = vmatmul.bf16.vlgmr.msra.gmra.mxu1 %v609_v26  ;;  %491 = vmatmul.bf16.vlgmr.msra.gmra.mxu3 %v673_v27  ;;  %v716_v26 = vld [vmem:[#allocation2 + $0xe0] sm:$0xf]  ;;  %v823_v27 = vld [vmem:[#allocation2 + $0xe4] sm:$0xf0]  ;;  %v653_v32 = vor.u32 %v807_v25, %v652_v24 }
  0x27   :  { %v717_v33 = vor.u32 %v823_v27, %v716_v26 }
  0x35   :  { %367 = vmatmul.bf16.gmra.mxu0 %v613_v36  ;;  %407 = vmatmul.bf16.gmra.mxu2 %v677_v37  ;;  %v660_v36 = vld [vmem:[#allocation2 + $0x70] sm:$0xf]  ;;  %v809_v37 = vld [vmem:[#allocation2 + $0x74] sm:$0xf0] }
  0x36   :  { %456 = vmatmul.bf16.gmra.mxu1 %v617_v38  ;;  %496 = vmatmul.bf16.gmra.mxu3 %v681_v39  ;;  %v724_v38 = vld [vmem:[#allocation2 + $0xf0] sm:$0xf]  ;;  %v825_v39 = vld [vmem:[#allocation2 + $0xf4] sm:$0xf0]  ;;  %v661_v44 = vor.u32 %v809_v37, %v660_v36 }
  0x37   :  { %v725_v45 = vor.u32 %v825_v39, %v724_v38 }
  0x45   :  { %372 = vmatmul.bf16.gmra.mxu0 %v621_v48  ;;  %412 = vmatmul.bf16.gmra.mxu2 %v685_v49  ;;  %v965_v48 = vld [vmem:[%s1129_s2] ss:$0 sm:$0xff] }
  0x46   :  { %461 = vmatmul.bf16.gmra.mxu1 %v625_v50  ;;  %501 = vmatmul.bf16.gmra.mxu3 %v689_v51 }
  0x55   :  { %377 = vmatmul.bf16.gmra.mxu0 %v629_v60  ;;  %417 = vmatmul.bf16.gmra.mxu2 %v693_v61 }
  0x56   :  { %466 = vmatmul.bf16.gmra.mxu1 %v633_v62  ;;  %506 = vmatmul.bf16.gmra.mxu3 %v697_v63 }
  0x65   :  { %382 = vmatmul.bf16.gmra.mxu0 %v637_v8  ;;  %422 = vmatmul.bf16.gmra.mxu2 %v701_v9 }
  0x66   :  { %471 = vmatmul.bf16.gmra.mxu1 %v641_v10  ;;  %511 = vmatmul.bf16.gmra.mxu3 %v705_v11 }
  0x75   :  { %387 = vmatmul.bf16.gmra.mxu0 %v645_v20  ;;  %427 = vmatmul.bf16.gmra.mxu2 %v709_v21 }
  0x76   :  { %476 = vmatmul.bf16.gmra.mxu1 %v649_v22  ;;  %516 = vmatmul.bf16.gmra.mxu3 %v713_v23 }
  0x85   :  { %392 = vmatmul.bf16.gmra.mxu0 %v653_v32  ;;  %432 = vmatmul.bf16.gmra.mxu2 %v717_v33 }
  0x86   :  { %481 = vmatmul.bf16.gmra.mxu1 %v657_v34  ;;  %521 = vmatmul.bf16.gmra.mxu3 %v721_v35 }
  0x95   :  { %397 = vmatmul.bf16.gmra.mxu0 %v661_v44  ;;  %437 = vmatmul.bf16.gmra.mxu2 %v725_v45 }
  0x96   :  { %486 = vmatmul.bf16.gmra.mxu1 %v665_v46  ;;  %526 = vmatmul.bf16.gmra.mxu3 %v729_v47 }
  0xa2   :  { %v363_v49 = vpop.f32.mrf.mxu0 }
  0xa3   :  { %v364_v50 = vadd.f32 %v965_v48, %v363_v49  ;;  %v452_v51 = vpop.f32.mrf.mxu1 }
  0xa5   :  { %v453_v52 = vadd.f32 %v452_v51, %v364_v50 }
  0xa7   :  { %v532_v53 = vpack.c.bf16 %v453_v52, %v453_v52 }
  0xa8   :  { %v403_v54 = vpop.f32.mrf.mxu2 }
  0xa9   :  { %565 = vst.msk [vmem:[%s1130_s3] sm:$0xf] %vm564_vm0, %v532_v53  ;;  %v404_v55 = vadd.f32 %v965_v48, %v403_v54  ;;  %v492_v56 = vpop.f32.mrf.mxu3 }
  0xaa   :  { %v365_v57 = vpop.f32.mrf.mxu0 }
  0xab   :  { %v493_v58 = vadd.f32 %v492_v56, %v404_v55  ;;  %v366_v59 = vadd.f32 %v965_v48, %v365_v57  ;;  %v454_v60 = vpop.f32.mrf.mxu1 }
  0xad   :  { %v548_v61 = vpack.c.bf16 %v493_v58, %v493_v58  ;;  %v455_v62 = vadd.f32 %v454_v60, %v366_v59 }
  0xaf   :  { %581 = vst.msk [vmem:[%s1130_s3 + $0x40] sm:$0xf] %vm564_vm0, %v548_v61  ;;  %v533_v63 = vpack.c.bf16 %v455_v62, %v455_v62 }
  0xb0   :  { %v405_v0 = vpop.f32.mrf.mxu2 }
  0xb1   :  { %566 = vst.msk [vmem:[%s1130_s3 + $0x4] sm:$0xf] %vm564_vm0, %v533_v63  ;;  %v406_v1 = vadd.f32 %v965_v48, %v405_v0  ;;  %v494_v2 = vpop.f32.mrf.mxu3 }
  0xb2   :  { %v368_v3 = vpop.f32.mrf.mxu0 }
  0xb3   :  { %v495_v4 = vadd.f32 %v494_v2, %v406_v1  ;;  %v369_v5 = vadd.f32 %v965_v48, %v368_v3  ;;  %v457_v6 = vpop.f32.mrf.mxu1 }
  0xb5   :  { %v549_v7 = vpack.c.bf16 %v495_v4, %v495_v4  ;;  %v458_v8 = vadd.f32 %v457_v6, %v369_v5 }
  0xb7   :  { %582 = vst.msk [vmem:[%s1130_s3 + $0x44] sm:$0xf] %vm564_vm0, %v549_v7  ;;  %v534_v9 = vpack.c.bf16 %v458_v8, %v458_v8 }
  0xb8   :  { %v408_v10 = vpop.f32.mrf.mxu2 }
  0xb9   :  { %567 = vst.msk [vmem:[%s1130_s3 + $0x8] sm:$0xf] %vm564_vm0, %v534_v9  ;;  %v409_v11 = vadd.f32 %v965_v48, %v408_v10  ;;  %v497_v12 = vpop.f32.mrf.mxu3 }
  0xba   :  { %v370_v13 = vpop.f32.mrf.mxu0 }
  0xbb   :  { %v498_v14 = vadd.f32 %v497_v12, %v409_v11  ;;  %v371_v15 = vadd.f32 %v965_v48, %v370_v13  ;;  %v459_v16 = vpop.f32.mrf.mxu1 }
  0xbd   :  { %v550_v17 = vpack.c.bf16 %v498_v14, %v498_v14  ;;  %v460_v18 = vadd.f32 %v459_v16, %v371_v15 }
  0xbf   :  { %583 = vst.msk [vmem:[%s1130_s3 + $0x48] sm:$0xf] %vm564_vm0, %v550_v17  ;;  %v535_v19 = vpack.c.bf16 %v460_v18, %v460_v18 }
  0xc0   :  { %v410_v20 = vpop.f32.mrf.mxu2 }
  0xc1   :  { %568 = vst.msk [vmem:[%s1130_s3 + $0xc] sm:$0xf] %vm564_vm0, %v535_v19  ;;  %v411_v21 = vadd.f32 %v965_v48, %v410_v20  ;;  %v499_v22 = vpop.f32.mrf.mxu3 }
  0xc2   :  { %v373_v23 = vpop.f32.mrf.mxu0 }
  0xc3   :  { %v500_v24 = vadd.f32 %v499_v22, %v411_v21  ;;  %v374_v25 = vadd.f32 %v965_v48, %v373_v23  ;;  %v462_v26 = vpop.f32.mrf.mxu1 }
  0xc5   :  { %v551_v27 = vpack.c.bf16 %v500_v24, %v500_v24  ;;  %v463_v28 = vadd.f32 %v462_v26, %v374_v25 }
  0xc7   :  { %584 = vst.msk [vmem:[%s1130_s3 + $0x4c] sm:$0xf] %vm564_vm0, %v551_v27  ;;  %v536_v29 = vpack.c.bf16 %v463_v28, %v463_v28 }
  0xc8   :  { %v413_v30 = vpop.f32.mrf.mxu2 }
  0xc9   :  { %569 = vst.msk [vmem:[%s1130_s3 + $0x10] sm:$0xf] %vm564_vm0, %v536_v29  ;;  %v414_v31 = vadd.f32 %v965_v48, %v413_v30  ;;  %v502_v32 = vpop.f32.mrf.mxu3 }
  0xca   :  { %v375_v33 = vpop.f32.mrf.mxu0 }
  0xcb   :  { %v503_v34 = vadd.f32 %v502_v32, %v414_v31  ;;  %v376_v35 = vadd.f32 %v965_v48, %v375_v33  ;;  %v464_v36 = vpop.f32.mrf.mxu1 }
  0xcd   :  { %v552_v37 = vpack.c.bf16 %v503_v34, %v503_v34  ;;  %v465_v38 = vadd.f32 %v464_v36, %v376_v35 }
  0xcf   :  { %585 = vst.msk [vmem:[%s1130_s3 + $0x50] sm:$0xf] %vm564_vm0, %v552_v37  ;;  %v537_v39 = vpack.c.bf16 %v465_v38, %v465_v38 }
  0xd0   :  { %v415_v40 = vpop.f32.mrf.mxu2 }
  0xd1   :  { %570 = vst.msk [vmem:[%s1130_s3 + $0x14] sm:$0xf] %vm564_vm0, %v537_v39  ;;  %v416_v41 = vadd.f32 %v965_v48, %v415_v40  ;;  %v504_v42 = vpop.f32.mrf.mxu3 }
  0xd2   :  { %v378_v43 = vpop.f32.mrf.mxu0 }
  0xd3   :  { %v505_v44 = vadd.f32 %v504_v42, %v416_v41  ;;  %v379_v45 = vadd.f32 %v965_v48, %v378_v43  ;;  %v467_v46 = vpop.f32.mrf.mxu1 }
  0xd5   :  { %v553_v47 = vpack.c.bf16 %v505_v44, %v505_v44  ;;  %v468_v49 = vadd.f32 %v467_v46, %v379_v45 }
  0xd7   :  { %586 = vst.msk [vmem:[%s1130_s3 + $0x54] sm:$0xf] %vm564_vm0, %v553_v47  ;;  %v538_v50 = vpack.c.bf16 %v468_v49, %v468_v49 }
  0xd8   :  { %v418_v51 = vpop.f32.mrf.mxu2 }
  0xd9   :  { %571 = vst.msk [vmem:[%s1130_s3 + $0x18] sm:$0xf] %vm564_vm0, %v538_v50  ;;  %v419_v52 = vadd.f32 %v965_v48, %v418_v51  ;;  %v507_v53 = vpop.f32.mrf.mxu3 }
  0xda   :  { %v380_v54 = vpop.f32.mrf.mxu0 }
  0xdb   :  { %v508_v55 = vadd.f32 %v507_v53, %v419_v52  ;;  %v381_v56 = vadd.f32 %v965_v48, %v380_v54  ;;  %v469_v57 = vpop.f32.mrf.mxu1 }
  0xdd   :  { %v554_v58 = vpack.c.bf16 %v508_v55, %v508_v55  ;;  %v470_v59 = vadd.f32 %v469_v57, %v381_v56 }
  0xdf   :  { %587 = vst.msk [vmem:[%s1130_s3 + $0x58] sm:$0xf] %vm564_vm0, %v554_v58  ;;  %v539_v60 = vpack.c.bf16 %v470_v59, %v470_v59 }
  0xe0   :  { %v420_v61 = vpop.f32.mrf.mxu2 }
  0xe1   :  { %572 = vst.msk [vmem:[%s1130_s3 + $0x1c] sm:$0xf] %vm564_vm0, %v539_v60  ;;  %v421_v62 = vadd.f32 %v965_v48, %v420_v61  ;;  %v509_v63 = vpop.f32.mrf.mxu3 }
  0xe2   :  { %v383_v0 = vpop.f32.mrf.mxu0 }
  0xe3   :  { %v510_v1 = vadd.f32 %v509_v63, %v421_v62  ;;  %v384_v2 = vadd.f32 %v965_v48, %v383_v0  ;;  %v472_v3 = vpop.f32.mrf.mxu1 }
  0xe5   :  { %v555_v4 = vpack.c.bf16 %v510_v1, %v510_v1  ;;  %v473_v5 = vadd.f32 %v472_v3, %v384_v2 }
  0xe7   :  { %588 = vst.msk [vmem:[%s1130_s3 + $0x5c] sm:$0xf] %vm564_vm0, %v555_v4  ;;  %v540_v6 = vpack.c.bf16 %v473_v5, %v473_v5 }
  0xe8   :  { %v423_v7 = vpop.f32.mrf.mxu2 }
  0xe9   :  { %573 = vst.msk [vmem:[%s1130_s3 + $0x20] sm:$0xf] %vm564_vm0, %v540_v6  ;;  %v424_v8 = vadd.f32 %v965_v48, %v423_v7  ;;  %v512_v9 = vpop.f32.mrf.mxu3 }
  0xea   :  { %v385_v10 = vpop.f32.mrf.mxu0 }
  0xeb   :  { %v513_v11 = vadd.f32 %v512_v9, %v424_v8  ;;  %v386_v12 = vadd.f32 %v965_v48, %v385_v10  ;;  %v474_v13 = vpop.f32.mrf.mxu1 }
  0xed   :  { %v556_v14 = vpack.c.bf16 %v513_v11, %v513_v11  ;;  %v475_v15 = vadd.f32 %v474_v13, %v386_v12 }
  0xef   :  { %589 = vst.msk [vmem:[%s1130_s3 + $0x60] sm:$0xf] %vm564_vm0, %v556_v14  ;;  %v541_v16 = vpack.c.bf16 %v475_v15, %v475_v15 }
  0xf0   :  { %v425_v17 = vpop.f32.mrf.mxu2 }
  0xf1   :  { %574 = vst.msk [vmem:[%s1130_s3 + $0x24] sm:$0xf] %vm564_vm0, %v541_v16  ;;  %v426_v18 = vadd.f32 %v965_v48, %v425_v17  ;;  %v514_v19 = vpop.f32.mrf.mxu3 }
  0xf2   :  { %v388_v20 = vpop.f32.mrf.mxu0 }
  0xf3   :  { %v515_v21 = vadd.f32 %v514_v19, %v426_v18  ;;  %v389_v22 = vadd.f32 %v965_v48, %v388_v20  ;;  %v477_v23 = vpop.f32.mrf.mxu1 }
  0xf5   :  { %v557_v24 = vpack.c.bf16 %v515_v21, %v515_v21  ;;  %v478_v25 = vadd.f32 %v477_v23, %v389_v22 }
  0xf7   :  { %590 = vst.msk [vmem:[%s1130_s3 + $0x64] sm:$0xf] %vm564_vm0, %v557_v24  ;;  %v542_v26 = vpack.c.bf16 %v478_v25, %v478_v25 }
  0xf8   :  { %v428_v27 = vpop.f32.mrf.mxu2 }
  0xf9   :  { %575 = vst.msk [vmem:[%s1130_s3 + $0x28] sm:$0xf] %vm564_vm0, %v542_v26  ;;  %v429_v28 = vadd.f32 %v965_v48, %v428_v27  ;;  %v517_v29 = vpop.f32.mrf.mxu3 }
  0xfa   :  { %v390_v30 = vpop.f32.mrf.mxu0 }
  0xfb   :  { %v518_v31 = vadd.f32 %v517_v29, %v429_v28  ;;  %v391_v32 = vadd.f32 %v965_v48, %v390_v30  ;;  %v479_v33 = vpop.f32.mrf.mxu1 }
  0xfd   :  { %v558_v34 = vpack.c.bf16 %v518_v31, %v518_v31  ;;  %v480_v35 = vadd.f32 %v479_v33, %v391_v32 }
  0xff   :  { %591 = vst.msk [vmem:[%s1130_s3 + $0x68] sm:$0xf] %vm564_vm0, %v558_v34  ;;  %v543_v36 = vpack.c.bf16 %v480_v35, %v480_v35 }
 0x100   :  { %v430_v37 = vpop.f32.mrf.mxu2 }
 0x101   :  { %576 = vst.msk [vmem:[%s1130_s3 + $0x2c] sm:$0xf] %vm564_vm0, %v543_v36  ;;  %v431_v38 = vadd.f32 %v965_v48, %v430_v37  ;;  %v519_v39 = vpop.f32.mrf.mxu3 }
 0x102   :  { %v393_v40 = vpop.f32.mrf.mxu0 }
 0x103   :  { %v520_v41 = vadd.f32 %v519_v39, %v431_v38  ;;  %v394_v42 = vadd.f32 %v965_v48, %v393_v40  ;;  %v482_v43 = vpop.f32.mrf.mxu1 }
 0x105   :  { %v559_v44 = vpack.c.bf16 %v520_v41, %v520_v41  ;;  %v483_v45 = vadd.f32 %v482_v43, %v394_v42 }
 0x107   :  { %592 = vst.msk [vmem:[%s1130_s3 + $0x6c] sm:$0xf] %vm564_vm0, %v559_v44  ;;  %v544_v46 = vpack.c.bf16 %v483_v45, %v483_v45 }
 0x108   :  { %v433_v47 = vpop.f32.mrf.mxu2 }
 0x109   :  { %577 = vst.msk [vmem:[%s1130_s3 + $0x30] sm:$0xf] %vm564_vm0, %v544_v46  ;;  %v434_v49 = vadd.f32 %v965_v48, %v433_v47  ;;  %v522_v50 = vpop.f32.mrf.mxu3 }
 0x10a   :  { %v395_v51 = vpop.f32.mrf.mxu0 }
 0x10b   :  { %v523_v52 = vadd.f32 %v522_v50, %v434_v49  ;;  %v396_v53 = vadd.f32 %v965_v48, %v395_v51  ;;  %v484_v54 = vpop.f32.mrf.mxu1 }
 0x10d   :  { %v560_v55 = vpack.c.bf16 %v523_v52, %v523_v52  ;;  %v485_v56 = vadd.f32 %v484_v54, %v396_v53 }
 0x10f   :  { %593 = vst.msk [vmem:[%s1130_s3 + $0x70] sm:$0xf] %vm564_vm0, %v560_v55  ;;  %v545_v57 = vpack.c.bf16 %v485_v56, %v485_v56 }
 0x110   :  { %v435_v58 = vpop.f32.mrf.mxu2 }
 0x111   :  { %578 = vst.msk [vmem:[%s1130_s3 + $0x34] sm:$0xf] %vm564_vm0, %v545_v57  ;;  %v436_v59 = vadd.f32 %v965_v48, %v435_v58  ;;  %v524_v60 = vpop.f32.mrf.mxu3 }
 0x112   :  { %v398_v61 = vpop.f32.mrf.mxu0 }
 0x113   :  { %v525_v62 = vadd.f32 %v524_v60, %v436_v59  ;;  %v399_v63 = vadd.f32 %v965_v48, %v398_v61  ;;  %v487_v0 = vpop.f32.mrf.mxu1 }
 0x115   :  { %v561_v1 = vpack.c.bf16 %v525_v62, %v525_v62  ;;  %v488_v2 = vadd.f32 %v487_v0, %v399_v63 }
 0x117   :  { %594 = vst.msk [vmem:[%s1130_s3 + $0x74] sm:$0xf] %vm564_vm0, %v561_v1  ;;  %v546_v3 = vpack.c.bf16 %v488_v2, %v488_v2 }
 0x118   :  { %v438_v4 = vpop.f32.mrf.mxu2 }
 0x119   :  { %579 = vst.msk [vmem:[%s1130_s3 + $0x38] sm:$0xf] %vm564_vm0, %v546_v3  ;;  %v439_v5 = vadd.f32 %v965_v48, %v438_v4  ;;  %v527_v6 = vpop.f32.mrf.mxu3 }
 0x11a   :  { %v400_v7 = vpop.f32.mrf.mxu0 }
 0x11b   :  { %v528_v8 = vadd.f32 %v527_v6, %v439_v5  ;;  %v401_v9 = vadd.f32 %v965_v48, %v400_v7  ;;  %v489_v10 = vpop.f32.mrf.mxu1 }
 0x11d   :  { %v562_v11 = vpack.c.bf16 %v528_v8, %v528_v8  ;;  %v490_v12 = vadd.f32 %v489_v10, %v401_v9 }
 0x11f   :  { %595 = vst.msk [vmem:[%s1130_s3 + $0x78] sm:$0xf] %vm564_vm0, %v562_v11  ;;  %v547_v13 = vpack.c.bf16 %v490_v12, %v490_v12 }
 0x120   :  { %v440_v14 = vpop.f32.mrf.mxu2 }
 0x121   :  { %580 = vst.msk [vmem:[%s1130_s3 + $0x3c] sm:$0xf] %vm564_vm0, %v547_v13  ;;  %v441_v15 = vadd.f32 %v965_v48, %v440_v14  ;;  %v529_v16 = vpop.f32.mrf.mxu3 }
 0x123   :  { %v530_v17 = vadd.f32 %v529_v16, %v441_v15 }
 0x125   :  { %v563_v18 = vpack.c.bf16 %v530_v17, %v530_v17 }
 0x127   :  { %596 = vst.msk [vmem:[%s1130_s3 + $0x7c] sm:$0xf] %vm564_vm0, %v563_v18 }
 0x128   :  { %601 = vsyncpa [#allocation3], 1 }

</bundles_post_ra>
